<compile_context>
chip_gen: v5e
topology: v5e:2x2
jax: 0.10.0
libtpu: 0.0.40
codegen_flags: <defaults>
</compile_context>

<pallas_src>
import functools

import jax
import jax.numpy as jnp
from jax.experimental import pallas as pl
from jax.experimental.pallas import tpu as pltpu


def _round_up(x, m):
    return ((x + m - 1) // m) * m


# ----------------------------------------------------------------------------
# Fused kernel: both Martinez MLPs + row masking, one grid step per batch tile.
# ----------------------------------------------------------------------------
def _combined_kernel(x_ref, mask_ref,
                     pw_ref, psh_ref, dw_ref, dsh_ref,
                     pose3d_ref, depth_ref, *, n_layers):
    def layer(h, w_ref, sh_ref, l, relu):
        # bf16 (or weight-dtype) operands, f32 accumulation on the MXU.
        y = jnp.dot(h.astype(w_ref.dtype), w_ref[l],
                    preferred_element_type=jnp.float32)
        y = y + sh_ref[l]                      # folded bias + BN shift (f32)
        if relu:
            y = jnp.maximum(y, 0.0)
        return y

    def martinez(h, w_ref, sh_ref):
        h = layer(h, w_ref, sh_ref, 0, True)            # input layer
        n_blocks = (n_layers - 2) // 2
        for b in range(n_blocks):                       # residual blocks
            y = layer(h, w_ref, sh_ref, 1 + 2 * b, True)
            h = layer(y, w_ref, sh_ref, 2 + 2 * b, True) + h   # post-ReLU skip
        return layer(h, w_ref, sh_ref, n_layers - 1, False)    # output layer

    x = x_ref[...]                                      # (tm, H) f32
    pose3d = martinez(x, pw_ref, psh_ref)               # (tm, H) f32 (padded)
    pose3d_ref[...] = pose3d.astype(pose3d_ref.dtype)

    weak = martinez(pose3d, dw_ref, dsh_ref)            # (tm, H) f32 (padded)
    # zero the rows that already have full pose annotation
    depth_ref[...] = (weak * mask_ref[...]).astype(depth_ref.dtype)


# ----------------------------------------------------------------------------
# Parameter construction: fold BN into the Linear, pad to (H, H) / (1, H),
# stack the 6 layers per net into one array so the kernel takes 4 weight args.
# ----------------------------------------------------------------------------
def _fold_linear_bn(key, fan_in, fan_out, eps=1e-5):
    kw, kb, kg, kbe, km, kv = jax.random.split(key, 6)
    w = jax.random.normal(kw, (fan_in, fan_out), jnp.float32) / jnp.sqrt(fan_in)
    b = 0.01 * jax.random.normal(kb, (fan_out,), jnp.float32)
    gamma = 1.0 + 0.05 * jax.random.normal(kg, (fan_out,), jnp.float32)
    beta = 0.05 * jax.random.normal(kbe, (fan_out,), jnp.float32)
    rmean = 0.05 * jax.random.normal(km, (fan_out,), jnp.float32)
    rvar = 1.0 + 0.05 * jnp.abs(jax.random.normal(kv, (fan_out,), jnp.float32))
    scale = gamma / jnp.sqrt(rvar + eps)          # eval-mode BN per-feature scale
    w_fold = w * scale[None, :]                   # fold scale into weight columns
    shift = (b - rmean) * scale + beta            # remaining per-feature shift
    return w_fold, shift


def _plain_linear(key, fan_in, fan_out):
    kw, kb = jax.random.split(key)
    w = jax.random.normal(kw, (fan_in, fan_out), jnp.float32) / jnp.sqrt(fan_in)
    b = 0.01 * jax.random.normal(kb, (fan_out,), jnp.float32)
    return w, b


def make_martinez_params(key, in_size, hidden, out_size, n_blocks=2,
                         weight_dtype=jnp.bfloat16):
    assert in_size <= hidden and out_size <= hidden
    n_layers = 2 + 2 * n_blocks
    keys = jax.random.split(key, n_layers)
    layers = [_fold_linear_bn(keys[0], in_size, hidden)]
    for i in range(2 * n_blocks):
        layers.append(_fold_linear_bn(keys[1 + i], hidden, hidden))
    layers.append(_plain_linear(keys[-1], hidden, out_size))

    W = jnp.zeros((n_layers, hidden, hidden), jnp.float32)
    SH = jnp.zeros((n_layers, 1, hidden), jnp.float32)
    for l, (w, sh) in enumerate(layers):          # zero-pad to (H, H) / (1, H)
        W = W.at[l, :w.shape[0], :w.shape[1]].set(w)
        SH = SH.at[l, 0, :sh.shape[0]].set(sh)
    return {"W": W.astype(weight_dtype), "SH": SH,
            "in_size": in_size, "out_size": out_size,
            "hidden": hidden, "n_layers": n_layers}


# ----------------------------------------------------------------------------
# CombinedModel forward
# ----------------------------------------------------------------------------
def combined_model_forward(pose2d, has_pose_annot, posenet_params,
                           decoder_params, *, tm=None):
    M, in_size = pose2d.shape
    H = posenet_params["hidden"]
    L = posenet_params["n_layers"]
    assert decoder_params["hidden"] == H and decoder_params["n_layers"] == L
    assert posenet_params["in_size"] == in_size
    assert decoder_params["in_size"] == posenet_params["out_size"]
    pose_out = posenet_params["out_size"]
    weak_out = decoder_params["out_size"]

    if tm is None:
        # fill MXU rows; clamp to (padded) batch.  256 on v6e/v7x-sized MXUs,
        # still fine on v5e (two 128-row passes per step).
        tm = min(256, _round_up(M, 8))
    M_pad = _round_up(M, tm)

    # pad batch to a tile multiple and features to the 128-lane hidden width
    x_pad = jnp.zeros((M_pad, H), jnp.float32)
    x_pad = x_pad.at[:M, :in_size].set(pose2d.astype(jnp.float32))
    need_weak = jnp.logical_not(has_pose_annot).astype(jnp.float32).reshape(M, 1)
    mask = jnp.zeros((M_pad, 1), jnp.float32).at[:M, :].set(need_weak)

    grid = (M_pad // tm,)
    pose3d_pad, depth_pad = pl.pallas_call(
        functools.partial(_combined_kernel, n_layers=L),
        out_shape=(jax.ShapeDtypeStruct((M_pad, H), jnp.float32),
                   jax.ShapeDtypeStruct((M_pad, H), jnp.float32)),
        grid=grid,
        in_specs=[
            pl.BlockSpec((tm, H), lambda i: (i, 0)),        # pose2d tile
            pl.BlockSpec((tm, 1), lambda i: (i, 0)),        # ~has_pose_annot
            pl.BlockSpec((L, H, H), lambda i: (0, 0, 0)),   # pose_net weights (resident)
            pl.BlockSpec((L, 1, H), lambda i: (0, 0, 0)),   # pose_net shifts
            pl.BlockSpec((L, H, H), lambda i: (0, 0, 0)),   # decoder weights (resident)
            pl.BlockSpec((L, 1, H), lambda i: (0, 0, 0)),   # decoder shifts
        ],
        out_specs=(pl.BlockSpec((tm, H), lambda i: (i, 0)),  # pose3d (lane-dense slab)
                   pl.BlockSpec((tm, H), lambda i: (i, 0))), # depths (lane-dense slab)
        compiler_params=pltpu.CompilerParams(
            dimension_semantics=("parallel",)),
    )(x_pad, mask, posenet_params["W"], posenet_params["SH"],
      decoder_params["W"], decoder_params["SH"])

    return pose3d_pad[:M, :pose_out], depth_pad[:M, :weak_out]


# ----------------------------------------------------------------------------
# Pure-JAX reference mirroring the same math (padded, folded, bf16 matmuls).
# ----------------------------------------------------------------------------
def _ref_martinez(x_pad, params):
    W, SH = params["W"], params["SH"]

    def layer(h, l, relu):
        y = jnp.dot(h.astype(W.dtype), W[l],
                    preferred_element_type=jnp.float32) + SH[l]
        return jnp.maximum(y, 0.0) if relu else y

    h = layer(x_pad, 0, True)
    n_blocks = (params["n_layers"] - 2) // 2
    for b in range(n_blocks):
        y = layer(h, 1 + 2 * b, True)
        h = layer(y, 2 + 2 * b, True) + h
    return layer(h, params["n_layers"] - 1, False)


if __name__ == "__main__":
    key = jax.random.PRNGKey(0)
    k_pose, k_dec, k_x, k_annot = jax.random.split(key, 4)

    batch = 8
    input_size = 32        # 16 joints x 2D
    output_size = 48       # 16 joints x 3D
    weak_output_size = 16  # jointwise depths
    hidden = 128

    posenet_params = make_martinez_params(k_pose, input_size, hidden, output_size)
    decoder_params = make_martinez_params(k_dec, output_size, hidden, weak_output_size)

    pose2d = jax.random.normal(k_x, (batch, input_size), jnp.float32)
    has_pose_annot = jax.random.bernoulli(k_annot, 0.5, (batch, 1))

    pose3d, depths = combined_model_forward(
        pose2d, has_pose_annot, posenet_params, decoder_params)
    jax.block_until_ready((pose3d, depths))

    # ---- sanity check against the plain-JAX reference -----------------------
    x_pad = jnp.zeros((batch, hidden), jnp.float32).at[:, :input_size].set(pose2d)
    ref_pose3d_pad = _ref_martinez(x_pad, posenet_params)
    ref_weak_pad = _ref_martinez(ref_pose3d_pad, decoder_params)
    need_weak = jnp.logical_not(has_pose_annot).astype(jnp.float32)
    ref_pose3d = ref_pose3d_pad[:, :output_size]
    ref_depths = (ref_weak_pad * need_weak)[:, :weak_output_size]

    assert pose3d.shape == (batch, output_size)
    assert depths.shape == (batch, weak_output_size)
    assert jnp.allclose(pose3d, ref_pose3d, atol=1e-2, rtol=1e-2)
    assert jnp.allclose(depths, ref_depths, atol=1e-2, rtol=1e-2)

    print("KERNEL_OK")
</pallas_src>

<mosaic_0001>
module attributes {stable_mosaic.version = 11 : i64} {
  func.func @_combined_kernel(%arg0: i32, %arg1: memref<8x128xf32, #tpu.memory_space<vmem>>, %arg2: memref<8x1xf32, #tpu.memory_space<vmem>>, %arg3: memref<6x128x128xbf16, #tpu.memory_space<vmem>>, %arg4: memref<6x1x128xf32, #tpu.memory_space<vmem>>, %arg5: memref<6x128x128xbf16, #tpu.memory_space<vmem>>, %arg6: memref<6x1x128xf32, #tpu.memory_space<vmem>>, %arg7: memref<8x128xf32, #tpu.memory_space<vmem>>, %arg8: memref<8x128xf32, #tpu.memory_space<vmem>>) attributes {dimension_semantics = [#tpu.dimension_semantics<parallel>], iteration_bounds = array<i64: 1>, scalar_prefetch = 0 : i64, scratch_operands = 0 : i64, tpu.core_type = #tpu.core_type<tc>, window_params = [{transform_indices = @transform_0, window_bounds = array<i64: 8, 128>}, {transform_indices = @transform_1, window_bounds = array<i64: 8, 1>}, {pipeline_mode = #tpu.pipeline_mode<synchronous>, transform_indices = @transform_2, window_bounds = array<i64: 6, 128, 128>}, {pipeline_mode = #tpu.pipeline_mode<synchronous>, transform_indices = @transform_3, window_bounds = array<i64: 6, 1, 128>}, {pipeline_mode = #tpu.pipeline_mode<synchronous>, transform_indices = @transform_4, window_bounds = array<i64: 6, 128, 128>}, {pipeline_mode = #tpu.pipeline_mode<synchronous>, transform_indices = @transform_5, window_bounds = array<i64: 6, 1, 128>}, {transform_indices = @transform_6, window_bounds = array<i64: 8, 128>}, {transform_indices = @transform_7, window_bounds = array<i64: 8, 128>}]} {
    %c0 = arith.constant 0 : index
    %c0_0 = arith.constant 0 : index
    %0 = vector.load %arg1[%c0, %c0_0] : memref<8x128xf32, #tpu.memory_space<vmem>>, vector<8x128xf32>
    %1 = arith.truncf %0 : vector<8x128xf32> to vector<8x128xbf16>
    %c0_1 = arith.constant 0 : index
    %c0_2 = arith.constant 0 : index
    %c0_3 = arith.constant 0 : index
    %2 = vector.load %arg3[%c0_1, %c0_2, %c0_3] : memref<6x128x128xbf16, #tpu.memory_space<vmem>>, vector<1x128x128xbf16>
    %3 = vector.shape_cast %2 : vector<1x128x128xbf16> to vector<128x128xbf16>
    %cst = arith.constant dense<0.000000e+00> : vector<8x128xf32>
    %4 = tpu.matmul %1, %3, %cst {dimension_numbers = #tpu.dot_dimension_numbers<[1], [0], [0], [1], [0, 0, 1, 1], [], []>} : vector<8x128xbf16>, vector<128x128xbf16>, vector<8x128xf32> -> vector<8x128xf32>
    %c0_4 = arith.constant 0 : index
    %c0_5 = arith.constant 0 : index
    %c0_6 = arith.constant 0 : index
    %5 = vector.load %arg4[%c0_4, %c0_5, %c0_6] : memref<6x1x128xf32, #tpu.memory_space<vmem>>, vector<1x1x128xf32>
    %6 = vector.shape_cast %5 : vector<1x1x128xf32> to vector<1x128xf32>
    %7 = vector.broadcast %6 : vector<1x128xf32> to vector<8x128xf32>
    %8 = arith.addf %4, %7 : vector<8x128xf32>
    %cst_7 = arith.constant 0.000000e+00 : f32
    %9 = vector.broadcast %cst_7 : f32 to vector<8x128xf32>
    %10 = arith.maximumf %8, %9 : vector<8x128xf32>
    %11 = arith.truncf %10 : vector<8x128xf32> to vector<8x128xbf16>
    %c1 = arith.constant 1 : index
    %c0_8 = arith.constant 0 : index
    %c0_9 = arith.constant 0 : index
    %12 = vector.load %arg3[%c1, %c0_8, %c0_9] : memref<6x128x128xbf16, #tpu.memory_space<vmem>>, vector<1x128x128xbf16>
    %13 = vector.shape_cast %12 : vector<1x128x128xbf16> to vector<128x128xbf16>
    %cst_10 = arith.constant dense<0.000000e+00> : vector<8x128xf32>
    %14 = tpu.matmul %11, %13, %cst_10 {dimension_numbers = #tpu.dot_dimension_numbers<[1], [0], [0], [1], [0, 0, 1, 1], [], []>} : vector<8x128xbf16>, vector<128x128xbf16>, vector<8x128xf32> -> vector<8x128xf32>
    %c1_11 = arith.constant 1 : index
    %c0_12 = arith.constant 0 : index
    %c0_13 = arith.constant 0 : index
    %15 = vector.load %arg4[%c1_11, %c0_12, %c0_13] : memref<6x1x128xf32, #tpu.memory_space<vmem>>, vector<1x1x128xf32>
    %16 = vector.shape_cast %15 : vector<1x1x128xf32> to vector<1x128xf32>
    %17 = vector.broadcast %16 : vector<1x128xf32> to vector<8x128xf32>
    %18 = arith.addf %14, %17 : vector<8x128xf32>
    %cst_14 = arith.constant 0.000000e+00 : f32
    %19 = vector.broadcast %cst_14 : f32 to vector<8x128xf32>
    %20 = arith.maximumf %18, %19 : vector<8x128xf32>
    %21 = arith.truncf %20 : vector<8x128xf32> to vector<8x128xbf16>
    %c2 = arith.constant 2 : index
    %c0_15 = arith.constant 0 : index
    %c0_16 = arith.constant 0 : index
    %22 = vector.load %arg3[%c2, %c0_15, %c0_16] : memref<6x128x128xbf16, #tpu.memory_space<vmem>>, vector<1x128x128xbf16>
    %23 = vector.shape_cast %22 : vector<1x128x128xbf16> to vector<128x128xbf16>
    %cst_17 = arith.constant dense<0.000000e+00> : vector<8x128xf32>
    %24 = tpu.matmul %21, %23, %cst_17 {dimension_numbers = #tpu.dot_dimension_numbers<[1], [0], [0], [1], [0, 0, 1, 1], [], []>} : vector<8x128xbf16>, vector<128x128xbf16>, vector<8x128xf32> -> vector<8x128xf32>
    %c2_18 = arith.constant 2 : index
    %c0_19 = arith.constant 0 : index
    %c0_20 = arith.constant 0 : index
    %25 = vector.load %arg4[%c2_18, %c0_19, %c0_20] : memref<6x1x128xf32, #tpu.memory_space<vmem>>, vector<1x1x128xf32>
    %26 = vector.shape_cast %25 : vector<1x1x128xf32> to vector<1x128xf32>
    %27 = vector.broadcast %26 : vector<1x128xf32> to vector<8x128xf32>
    %28 = arith.addf %24, %27 : vector<8x128xf32>
    %cst_21 = arith.constant 0.000000e+00 : f32
    %29 = vector.broadcast %cst_21 : f32 to vector<8x128xf32>
    %30 = arith.maximumf %28, %29 : vector<8x128xf32>
    %31 = arith.addf %30, %10 : vector<8x128xf32>
    %32 = arith.truncf %31 : vector<8x128xf32> to vector<8x128xbf16>
    %c3 = arith.constant 3 : index
    %c0_22 = arith.constant 0 : index
    %c0_23 = arith.constant 0 : index
    %33 = vector.load %arg3[%c3, %c0_22, %c0_23] : memref<6x128x128xbf16, #tpu.memory_space<vmem>>, vector<1x128x128xbf16>
    %34 = vector.shape_cast %33 : vector<1x128x128xbf16> to vector<128x128xbf16>
    %cst_24 = arith.constant dense<0.000000e+00> : vector<8x128xf32>
    %35 = tpu.matmul %32, %34, %cst_24 {dimension_numbers = #tpu.dot_dimension_numbers<[1], [0], [0], [1], [0, 0, 1, 1], [], []>} : vector<8x128xbf16>, vector<128x128xbf16>, vector<8x128xf32> -> vector<8x128xf32>
    %c3_25 = arith.constant 3 : index
    %c0_26 = arith.constant 0 : index
    %c0_27 = arith.constant 0 : index
    %36 = vector.load %arg4[%c3_25, %c0_26, %c0_27] : memref<6x1x128xf32, #tpu.memory_space<vmem>>, vector<1x1x128xf32>
    %37 = vector.shape_cast %36 : vector<1x1x128xf32> to vector<1x128xf32>
    %38 = vector.broadcast %37 : vector<1x128xf32> to vector<8x128xf32>
    %39 = arith.addf %35, %38 : vector<8x128xf32>
    %cst_28 = arith.constant 0.000000e+00 : f32
    %40 = vector.broadcast %cst_28 : f32 to vector<8x128xf32>
    %41 = arith.maximumf %39, %40 : vector<8x128xf32>
    %42 = arith.truncf %41 : vector<8x128xf32> to vector<8x128xbf16>
    %c4 = arith.constant 4 : index
    %c0_29 = arith.constant 0 : index
    %c0_30 = arith.constant 0 : index
    %43 = vector.load %arg3[%c4, %c0_29, %c0_30] : memref<6x128x128xbf16, #tpu.memory_space<vmem>>, vector<1x128x128xbf16>
    %44 = vector.shape_cast %43 : vector<1x128x128xbf16> to vector<128x128xbf16>
    %cst_31 = arith.constant dense<0.000000e+00> : vector<8x128xf32>
    %45 = tpu.matmul %42, %44, %cst_31 {dimension_numbers = #tpu.dot_dimension_numbers<[1], [0], [0], [1], [0, 0, 1, 1], [], []>} : vector<8x128xbf16>, vector<128x128xbf16>, vector<8x128xf32> -> vector<8x128xf32>
    %c4_32 = arith.constant 4 : index
    %c0_33 = arith.constant 0 : index
    %c0_34 = arith.constant 0 : index
    %46 = vector.load %arg4[%c4_32, %c0_33, %c0_34] : memref<6x1x128xf32, #tpu.memory_space<vmem>>, vector<1x1x128xf32>
    %47 = vector.shape_cast %46 : vector<1x1x128xf32> to vector<1x128xf32>
    %48 = vector.broadcast %47 : vector<1x128xf32> to vector<8x128xf32>
    %49 = arith.addf %45, %48 : vector<8x128xf32>
    %cst_35 = arith.constant 0.000000e+00 : f32
    %50 = vector.broadcast %cst_35 : f32 to vector<8x128xf32>
    %51 = arith.maximumf %49, %50 : vector<8x128xf32>
    %52 = arith.addf %51, %31 : vector<8x128xf32>
    %53 = arith.truncf %52 : vector<8x128xf32> to vector<8x128xbf16>
    %c5 = arith.constant 5 : index
    %c0_36 = arith.constant 0 : index
    %c0_37 = arith.constant 0 : index
    %54 = vector.load %arg3[%c5, %c0_36, %c0_37] : memref<6x128x128xbf16, #tpu.memory_space<vmem>>, vector<1x128x128xbf16>
    %55 = vector.shape_cast %54 : vector<1x128x128xbf16> to vector<128x128xbf16>
    %cst_38 = arith.constant dense<0.000000e+00> : vector<8x128xf32>
    %56 = tpu.matmul %53, %55, %cst_38 {dimension_numbers = #tpu.dot_dimension_numbers<[1], [0], [0], [1], [0, 0, 1, 1], [], []>} : vector<8x128xbf16>, vector<128x128xbf16>, vector<8x128xf32> -> vector<8x128xf32>
    %c5_39 = arith.constant 5 : index
    %c0_40 = arith.constant 0 : index
    %c0_41 = arith.constant 0 : index
    %57 = vector.load %arg4[%c5_39, %c0_40, %c0_41] : memref<6x1x128xf32, #tpu.memory_space<vmem>>, vector<1x1x128xf32>
    %58 = vector.shape_cast %57 : vector<1x1x128xf32> to vector<1x128xf32>
    %59 = vector.broadcast %58 : vector<1x128xf32> to vector<8x128xf32>
    %60 = arith.addf %56, %59 : vector<8x128xf32>
    %c0_42 = arith.constant 0 : index
    %c0_43 = arith.constant 0 : index
    %61 = vector.load %arg7[%c0_42, %c0_43] : memref<8x128xf32, #tpu.memory_space<vmem>>, vector<8x128xf32>
    tpu.vector_store %arg7[%c0_42, %c0_43], %60 {strides = array<i32>} : memref<8x128xf32, #tpu.memory_space<vmem>>, vector<8x128xf32>,
    %62 = arith.truncf %60 : vector<8x128xf32> to vector<8x128xbf16>
    %c0_44 = arith.constant 0 : index
    %c0_45 = arith.constant 0 : index
    %c0_46 = arith.constant 0 : index
    %63 = vector.load %arg5[%c0_44, %c0_45, %c0_46] : memref<6x128x128xbf16, #tpu.memory_space<vmem>>, vector<1x128x128xbf16>
    %64 = vector.shape_cast %63 : vector<1x128x128xbf16> to vector<128x128xbf16>
    %cst_47 = arith.constant dense<0.000000e+00> : vector<8x128xf32>
    %65 = tpu.matmul %62, %64, %cst_47 {dimension_numbers = #tpu.dot_dimension_numbers<[1], [0], [0], [1], [0, 0, 1, 1], [], []>} : vector<8x128xbf16>, vector<128x128xbf16>, vector<8x128xf32> -> vector<8x128xf32>
    %c0_48 = arith.constant 0 : index
    %c0_49 = arith.constant 0 : index
    %c0_50 = arith.constant 0 : index
    %66 = vector.load %arg6[%c0_48, %c0_49, %c0_50] : memref<6x1x128xf32, #tpu.memory_space<vmem>>, vector<1x1x128xf32>
    %67 = vector.shape_cast %66 : vector<1x1x128xf32> to vector<1x128xf32>
    %68 = vector.broadcast %67 : vector<1x128xf32> to vector<8x128xf32>
    %69 = arith.addf %65, %68 : vector<8x128xf32>
    %cst_51 = arith.constant 0.000000e+00 : f32
    %70 = vector.broadcast %cst_51 : f32 to vector<8x128xf32>
    %71 = arith.maximumf %69, %70 : vector<8x128xf32>
    %72 = arith.truncf %71 : vector<8x128xf32> to vector<8x128xbf16>
    %c1_52 = arith.constant 1 : index
    %c0_53 = arith.constant 0 : index
    %c0_54 = arith.constant 0 : index
    %73 = vector.load %arg5[%c1_52, %c0_53, %c0_54] : memref<6x128x128xbf16, #tpu.memory_space<vmem>>, vector<1x128x128xbf16>
    %74 = vector.shape_cast %73 : vector<1x128x128xbf16> to vector<128x128xbf16>
    %cst_55 = arith.constant dense<0.000000e+00> : vector<8x128xf32>
    %75 = tpu.matmul %72, %74, %cst_55 {dimension_numbers = #tpu.dot_dimension_numbers<[1], [0], [0], [1], [0, 0, 1, 1], [], []>} : vector<8x128xbf16>, vector<128x128xbf16>, vector<8x128xf32> -> vector<8x128xf32>
    %c1_56 = arith.constant 1 : index
    %c0_57 = arith.constant 0 : index
    %c0_58 = arith.constant 0 : index
    %76 = vector.load %arg6[%c1_56, %c0_57, %c0_58] : memref<6x1x128xf32, #tpu.memory_space<vmem>>, vector<1x1x128xf32>
    %77 = vector.shape_cast %76 : vector<1x1x128xf32> to vector<1x128xf32>
    %78 = vector.broadcast %77 : vector<1x128xf32> to vector<8x128xf32>
    %79 = arith.addf %75, %78 : vector<8x128xf32>
    %cst_59 = arith.constant 0.000000e+00 : f32
    %80 = vector.broadcast %cst_59 : f32 to vector<8x128xf32>
    %81 = arith.maximumf %79, %80 : vector<8x128xf32>
    %82 = arith.truncf %81 : vector<8x128xf32> to vector<8x128xbf16>
    %c2_60 = arith.constant 2 : index
    %c0_61 = arith.constant 0 : index
    %c0_62 = arith.constant 0 : index
    %83 = vector.load %arg5[%c2_60, %c0_61, %c0_62] : memref<6x128x128xbf16, #tpu.memory_space<vmem>>, vector<1x128x128xbf16>
    %84 = vector.shape_cast %83 : vector<1x128x128xbf16> to vector<128x128xbf16>
    %cst_63 = arith.constant dense<0.000000e+00> : vector<8x128xf32>
    %85 = tpu.matmul %82, %84, %cst_63 {dimension_numbers = #tpu.dot_dimension_numbers<[1], [0], [0], [1], [0, 0, 1, 1], [], []>} : vector<8x128xbf16>, vector<128x128xbf16>, vector<8x128xf32> -> vector<8x128xf32>
    %c2_64 = arith.constant 2 : index
    %c0_65 = arith.constant 0 : index
    %c0_66 = arith.constant 0 : index
    %86 = vector.load %arg6[%c2_64, %c0_65, %c0_66] : memref<6x1x128xf32, #tpu.memory_space<vmem>>, vector<1x1x128xf32>
    %87 = vector.shape_cast %86 : vector<1x1x128xf32> to vector<1x128xf32>
    %88 = vector.broadcast %87 : vector<1x128xf32> to vector<8x128xf32>
    %89 = arith.addf %85, %88 : vector<8x128xf32>
    %cst_67 = arith.constant 0.000000e+00 : f32
    %90 = vector.broadcast %cst_67 : f32 to vector<8x128xf32>
    %91 = arith.maximumf %89, %90 : vector<8x128xf32>
    %92 = arith.addf %91, %71 : vector<8x128xf32>
    %93 = arith.truncf %92 : vector<8x128xf32> to vector<8x128xbf16>
    %c3_68 = arith.constant 3 : index
    %c0_69 = arith.constant 0 : index
    %c0_70 = arith.constant 0 : index
    %94 = vector.load %arg5[%c3_68, %c0_69, %c0_70] : memref<6x128x128xbf16, #tpu.memory_space<vmem>>, vector<1x128x128xbf16>
    %95 = vector.shape_cast %94 : vector<1x128x128xbf16> to vector<128x128xbf16>
    %cst_71 = arith.constant dense<0.000000e+00> : vector<8x128xf32>
    %96 = tpu.matmul %93, %95, %cst_71 {dimension_numbers = #tpu.dot_dimension_numbers<[1], [0], [0], [1], [0, 0, 1, 1], [], []>} : vector<8x128xbf16>, vector<128x128xbf16>, vector<8x128xf32> -> vector<8x128xf32>
    %c3_72 = arith.constant 3 : index
    %c0_73 = arith.constant 0 : index
    %c0_74 = arith.constant 0 : index
    %97 = vector.load %arg6[%c3_72, %c0_73, %c0_74] : memref<6x1x128xf32, #tpu.memory_space<vmem>>, vector<1x1x128xf32>
    %98 = vector.shape_cast %97 : vector<1x1x128xf32> to vector<1x128xf32>
    %99 = vector.broadcast %98 : vector<1x128xf32> to vector<8x128xf32>
    %100 = arith.addf %96, %99 : vector<8x128xf32>
    %cst_75 = arith.constant 0.000000e+00 : f32
    %101 = vector.broadcast %cst_75 : f32 to vector<8x128xf32>
    %102 = arith.maximumf %100, %101 : vector<8x128xf32>
    %103 = arith.truncf %102 : vector<8x128xf32> to vector<8x128xbf16>
    %c4_76 = arith.constant 4 : index
    %c0_77 = arith.constant 0 : index
    %c0_78 = arith.constant 0 : index
    %104 = vector.load %arg5[%c4_76, %c0_77, %c0_78] : memref<6x128x128xbf16, #tpu.memory_space<vmem>>, vector<1x128x128xbf16>
    %105 = vector.shape_cast %104 : vector<1x128x128xbf16> to vector<128x128xbf16>
    %cst_79 = arith.constant dense<0.000000e+00> : vector<8x128xf32>
    %106 = tpu.matmul %103, %105, %cst_79 {dimension_numbers = #tpu.dot_dimension_numbers<[1], [0], [0], [1], [0, 0, 1, 1], [], []>} : vector<8x128xbf16>, vector<128x128xbf16>, vector<8x128xf32> -> vector<8x128xf32>
    %c4_80 = arith.constant 4 : index
    %c0_81 = arith.constant 0 : index
    %c0_82 = arith.constant 0 : index
    %107 = vector.load %arg6[%c4_80, %c0_81, %c0_82] : memref<6x1x128xf32, #tpu.memory_space<vmem>>, vector<1x1x128xf32>
    %108 = vector.shape_cast %107 : vector<1x1x128xf32> to vector<1x128xf32>
    %109 = vector.broadcast %108 : vector<1x128xf32> to vector<8x128xf32>
    %110 = arith.addf %106, %109 : vector<8x128xf32>
    %cst_83 = arith.constant 0.000000e+00 : f32
    %111 = vector.broadcast %cst_83 : f32 to vector<8x128xf32>
    %112 = arith.maximumf %110, %111 : vector<8x128xf32>
    %113 = arith.addf %112, %92 : vector<8x128xf32>
    %114 = arith.truncf %113 : vector<8x128xf32> to vector<8x128xbf16>
    %c5_84 = arith.constant 5 : index
    %c0_85 = arith.constant 0 : index
    %c0_86 = arith.constant 0 : index
    %115 = vector.load %arg5[%c5_84, %c0_85, %c0_86] : memref<6x128x128xbf16, #tpu.memory_space<vmem>>, vector<1x128x128xbf16>
    %116 = vector.shape_cast %115 : vector<1x128x128xbf16> to vector<128x128xbf16>
    %cst_87 = arith.constant dense<0.000000e+00> : vector<8x128xf32>
    %117 = tpu.matmul %114, %116, %cst_87 {dimension_numbers = #tpu.dot_dimension_numbers<[1], [0], [0], [1], [0, 0, 1, 1], [], []>} : vector<8x128xbf16>, vector<128x128xbf16>, vector<8x128xf32> -> vector<8x128xf32>
    %c5_88 = arith.constant 5 : index
    %c0_89 = arith.constant 0 : index
    %c0_90 = arith.constant 0 : index
    %118 = vector.load %arg6[%c5_88, %c0_89, %c0_90] : memref<6x1x128xf32, #tpu.memory_space<vmem>>, vector<1x1x128xf32>
    %119 = vector.shape_cast %118 : vector<1x1x128xf32> to vector<1x128xf32>
    %120 = vector.broadcast %119 : vector<1x128xf32> to vector<8x128xf32>
    %121 = arith.addf %117, %120 : vector<8x128xf32>
    %c0_91 = arith.constant 0 : index
    %c0_92 = arith.constant 0 : index
    %122 = vector.load %arg2[%c0_91, %c0_92] : memref<8x1xf32, #tpu.memory_space<vmem>>, vector<8x1xf32>
    %123 = vector.broadcast %122 : vector<8x1xf32> to vector<8x128xf32>
    %124 = arith.mulf %121, %123 : vector<8x128xf32>
    %c0_93 = arith.constant 0 : index
    %c0_94 = arith.constant 0 : index
    %125 = vector.load %arg8[%c0_93, %c0_94] : memref<8x128xf32, #tpu.memory_space<vmem>>, vector<8x128xf32>
    tpu.vector_store %arg8[%c0_93, %c0_94], %124 {strides = array<i32>} : memref<8x128xf32, #tpu.memory_space<vmem>>, vector<8x128xf32>,
    return
  }
  func.func @transform_0(%arg0: i32) -> (i32, i32) {
    %c0_i32 = arith.constant 0 : i32
    %c0_i32_0 = arith.constant 0 : i32
    return %arg0, %c0_i32 : i32, i32
  }
  func.func @transform_1(%arg0: i32) -> (i32, i32) {
    %c0_i32 = arith.constant 0 : i32
    %c0_i32_0 = arith.constant 0 : i32
    return %arg0, %c0_i32 : i32, i32
  }
  func.func @transform_2(%arg0: i32) -> (i32, i32, i32) {
    %c0_i32 = arith.constant 0 : i32
    %c0_i32_0 = arith.constant 0 : i32
    %c0_i32_1 = arith.constant 0 : i32
    %c0_i32_2 = arith.constant 0 : i32
    return %c0_i32, %c0_i32_0, %c0_i32_1 : i32, i32, i32
  }
  func.func @transform_3(%arg0: i32) -> (i32, i32, i32) {
    %c0_i32 = arith.constant 0 : i32
    %c0_i32_0 = arith.constant 0 : i32
    %c0_i32_1 = arith.constant 0 : i32
    %c0_i32_2 = arith.constant 0 : i32
    return %c0_i32, %c0_i32_0, %c0_i32_1 : i32, i32, i32
  }
  func.func @transform_4(%arg0: i32) -> (i32, i32, i32) {
    %c0_i32 = arith.constant 0 : i32
    %c0_i32_0 = arith.constant 0 : i32
    %c0_i32_1 = arith.constant 0 : i32
    %c0_i32_2 = arith.constant 0 : i32
    return %c0_i32, %c0_i32_0, %c0_i32_1 : i32, i32, i32
  }
  func.func @transform_5(%arg0: i32) -> (i32, i32, i32) {
    %c0_i32 = arith.constant 0 : i32
    %c0_i32_0 = arith.constant 0 : i32
    %c0_i32_1 = arith.constant 0 : i32
    %c0_i32_2 = arith.constant 0 : i32
    return %c0_i32, %c0_i32_0, %c0_i32_1 : i32, i32, i32
  }
  func.func @transform_6(%arg0: i32) -> (i32, i32) {
    %c0_i32 = arith.constant 0 : i32
    %c0_i32_0 = arith.constant 0 : i32
    return %arg0, %c0_i32 : i32, i32
  }
  func.func @transform_7(%arg0: i32) -> (i32, i32) {
    %c0_i32 = arith.constant 0 : i32
    %c0_i32_0 = arith.constant 0 : i32
    return %arg0, %c0_i32 : i32, i32
  }
}

</mosaic_0001>

<bundles_post_ra>
// kernel: tpu_custom_call.1
= control target key start
LH: loop header
LB: loop body
LE: loop exit
PB: predicated region body
PF: predicated region fallthrough
CT: control target
= control target key end

     0   :  { %13 = vsyncpa [#allocation3], 0  ;;  %s1886_s0 = inlined_call_operand.vmem [shape: f32[8,128], index: 0, kind: input, shape index: {}]   ;;  %s1887_s1 = inlined_call_operand.vmem [shape: f32[8,1], index: 1, kind: input, shape index: {}]   ;;  %s1888_s2 = inlined_call_operand.hbm [shape: bf16[6,128,128], index: 2, kind: input, shape index: {}]   ;;  %s1889_s3 = inlined_call_operand.hbm [shape: f32[6,1,128], index: 3, kind: input, shape index: {}]   ;;  %s1890_s4 = inlined_call_operand.hbm [shape: bf16[6,128,128], index: 4, kind: input, shape index: {}]   ;;  %s1891_s5 = inlined_call_operand.hbm [shape: f32[6,1,128], index: 5, kind: input, shape index: {}]   ;;  %s1892_s6 = inlined_call_operand.hbm [shape: f32[8,128], index: 6, kind: output, shape index: {0}]   ;;  %s1893_s7 = inlined_call_operand.hbm [shape: f32[8,128], index: 7, kind: output, shape index: {1}]  }
   0x1   :  { %14 = vsyncpa [#allocation6], 0 }
   0x2   :  { %15 = vsyncpa [#allocation9], 0 }
   0x3   :  { %16 = vsyncpa [#allocation4], 0  ;;  %s39_s26 = sshll.u32 %s1889_s3, 4  ;;  %s40_s26 = int_to_ptr.hbm [resolvable:$true] %s39_s26 }
   0x4   :  { %17 = vsyncpa [#allocation12], 0  ;;  %s1811_s27 = smov [#allocation5]   ;;  %s26_s8 = sshll.u32 %s1888_s2, 4  ;;  %s27_s8 = int_to_ptr.hbm [resolvable:$true] %s26_s8 }
   0x5   :  { %s41_s28 = sshll.u32 %s1811_s27, 4  ;;  %s1812_s9 = smov 16   ;;  %s42_s28 = int_to_ptr.vmem [resolvable:$true] %s41_s28 }
   0x6   :  { %s1813_s10 = smov 1   ;;  %s1814_s11 = smov [#allocation2]  }
   0x7   :  { %47 = dma.hbm_to_vmem [thread:$0]  %s40_s26, 96, %s42_s28, [#allocation6], %s1812_s9, %s1812_s9, %s1813_s10  }
   0x8   :  { %s28_s12 = sshll.u32 %s1814_s11, 4  ;;  %s1815_s13 = smov 64   ;;  %s29_s12 = int_to_ptr.vmem [resolvable:$true] %s28_s12 }
   0x9   :  { %s1816_s14 = smov 4   ;;  %s52_s16 = sshll.u32 %s1890_s4, 4  ;;  %s53_s16 = int_to_ptr.hbm [resolvable:$true] %s52_s16 }
   0xa   :  { %34 = dma.hbm_to_vmem [thread:$0]  %s27_s8, 6144, %s29_s12, [#allocation3], %s1815_s13, %s1815_s13, %s1816_s14  }
   0xb   :  { %s1817_s17 = smov [#allocation7]   ;;  %s65_s20 = sshll.u32 %s1891_s5, 4  ;;  %s66_s20 = int_to_ptr.hbm [resolvable:$true] %s65_s20 }
   0xc   :  { %s54_s18 = sshll.u32 %s1817_s17, 4  ;;  %s1818_s21 = smov [#allocation8]   ;;  %s55_s18 = int_to_ptr.vmem [resolvable:$true] %s54_s18 }
   0xd   :  { %60 = dma.hbm_to_vmem [thread:$0]  %s53_s16, 6144, %s55_s18, [#allocation6], %s1815_s13, %s1815_s13, %s1816_s14  }
   0xe   :  { %s67_s22 = sshll.u32 %s1818_s21, 4  ;;  %s68_s22 = int_to_ptr.vmem [resolvable:$true] %s67_s22 }
   0xf   :  { %73 = dma.hbm_to_vmem [thread:$0]  %s66_s20, 96, %s68_s22, [#allocation9], %s1812_s9, %s1812_s9, %s1813_s10  }
  0x10   :  { %1801 = dma.done.wait [#allocation3], 6144  }
  0x11   :  { %1802 = vsyncadd [#allocation3], 4294961152 }
  0x12   :  { %1803 = dma.done.wait [#allocation6], 6240  }
  0x13   :  { %1804 = vsyncadd [#allocation6], 4294961056 }
  0x14   :  { %1805 = dma.done.wait [#allocation9], 96  }
  0x15   :  { %1806 = vsyncadd [#allocation9], 4294967200  ;;  %v1544_v0 = vld [vmem:[#allocation2 + $0x38] sm:$0xff]  ;;  %v1543_v1 = vld [vmem:[#allocation2 + $0x30] sm:$0xff]  ;;  %s1820_s24 = smov [#allocation10]   ;;  %s1125_s28 = sshll.u32 %s1892_s6, 4  ;;  %s1126_s28 = int_to_ptr.hbm [resolvable:$true] %s1125_s28 }
  0x16   :  { %160 = vmatpush.bf16.msra.mxu0 %v1544_v0  ;;  %v1552_v2 = vld [vmem:[#allocation2 + $0x78] sm:$0xff]  ;;  %v1542_v3 = vld [vmem:[#allocation2 + $0x28] sm:$0xff]  ;;  %v1551_v4 = vld [vmem:[#allocation2 + $0x70] sm:$0xff]  ;;  %s1123_s25 = sshll.u32 %s1820_s24, 4  ;;  %s1136_s9 = sshll.u32 %s1893_s7, 4  ;;  %s1124_s25 = int_to_ptr.vmem [resolvable:$true] %s1123_s25  ;;  %s1137_s9 = int_to_ptr.hbm [resolvable:$true] %s1136_s9 }
  0x17   :  { %245 = vmatpush.bf16.msra.mxu1 %v1552_v2  ;;  %v1550_v5 = vld [vmem:[#allocation2 + $0x68] sm:$0xff]  ;;  %v1541_v6 = vld [vmem:[#allocation2 + $0x20] sm:$0xff]  ;;  %v1540_v8 = vld [vmem:[#allocation2 + $0x18] sm:$0xff] }
  0x18   :  { %v1549_v7 = vld [vmem:[#allocation2 + $0x60] sm:$0xff]  ;;  %v1548_v9 = vld [vmem:[#allocation2 + $0x58] sm:$0xff]  ;;  %v1539_v10 = vld [vmem:[#allocation2 + $0x10] sm:$0xff] }
  0x19   :  { %v1547_v11 = vld [vmem:[#allocation2 + $0x50] sm:$0xff]  ;;  %v1538_v12 = vld [vmem:[#allocation2 + $0x8] sm:$0xff]  ;;  %v1537_v13 = vld [vmem:[#allocation2] sm:$0xff] }
  0x1a   :  { %161 = vmatpush.bf16.msra.mxu0 %v1543_v1  ;;  %v90_v14 = vld [vmem:[%s1886_s0] sm:$0xff]  ;;  %v1546_v16 = vld [vmem:[#allocation2 + $0x48] sm:$0xff]  ;;  %v1560_v18 = vld [vmem:[#allocation2 + $0xb8] sm:$0xff] }
  0x1b   :  { %246 = vmatpush.bf16.msra.mxu1 %v1551_v4  ;;  %v91_v15 = vpack.c.bf16 %v90_v14, %v90_v14  ;;  %v1545_v17 = vld [vmem:[#allocation2 + $0x40] sm:$0xff]  ;;  %330 = vmatpush.bf16.msra.mxu2 %v1560_v18  ;;  %v1559_v19 = vld [vmem:[#allocation2 + $0xb0] sm:$0xff]  ;;  %v1558_v20 = vld [vmem:[#allocation2 + $0xa8] sm:$0xff] }
  0x1c   :  { %v1557_v21 = vld [vmem:[#allocation2 + $0xa0] sm:$0xff]  ;;  %v1556_v22 = vld [vmem:[#allocation2 + $0x98] sm:$0xff]  ;;  %v1555_v23 = vld [vmem:[#allocation2 + $0x90] sm:$0xff] }
  0x1d   :  { %v1645_v24 = vld [vmem:[#allocation5] ss:$0 sm:$0xff]  ;;  %v1554_v30 = vld [vmem:[#allocation2 + $0x88] sm:$0xff]  ;;  %v1568_v32 = vld [vmem:[#allocation2 + $0xf8] sm:$0xff] }
  0x1e   :  { %162 = vmatpush.bf16.msra.mxu0 %v1542_v3  ;;  %v1553_v31 = vld [vmem:[#allocation2 + $0x80] sm:$0xff]  ;;  %416 = vmatpush.bf16.msra.mxu3 %v1568_v32  ;;  %v1567_v33 = vld [vmem:[#allocation2 + $0xf0] sm:$0xff]  ;;  %v1566_v34 = vld [vmem:[#allocation2 + $0xe8] sm:$0xff] }
  0x1f   :  { %247 = vmatpush.bf16.msra.mxu1 %v1550_v5  ;;  %331 = vmatpush.bf16.msra.mxu2 %v1559_v19  ;;  %v1565_v35 = vld [vmem:[#allocation2 + $0xe0] sm:$0xff]  ;;  %v1564_v36 = vld [vmem:[#allocation2 + $0xd8] sm:$0xff]  ;;  %v1563_v37 = vld [vmem:[#allocation2 + $0xd0] sm:$0xff] }
  0x20   :  { %v1646_v38 = vld [vmem:[#allocation5 + $0x1] ss:$0 sm:$0xff]  ;;  %v1562_v44 = vld [vmem:[#allocation2 + $0xc8] sm:$0xff]  ;;  %v1576_v46 = vld [vmem:[#allocation2 + $0x138] sm:$0xff] }
  0x21   :  { %v1561_v45 = vld [vmem:[#allocation2 + $0xc0] sm:$0xff]  ;;  %v1575_v47 = vld [vmem:[#allocation2 + $0x130] sm:$0xff]  ;;  %v1574_v48 = vld [vmem:[#allocation2 + $0x128] sm:$0xff] }
  0x22   :  { %163 = vmatpush.bf16.msra.mxu0 %v1541_v6  ;;  %417 = vmatpush.bf16.msra.mxu3 %v1567_v33  ;;  %v1573_v49 = vld [vmem:[#allocation2 + $0x120] sm:$0xff]  ;;  %v1572_v50 = vld [vmem:[#allocation2 + $0x118] sm:$0xff]  ;;  %v1571_v51 = vld [vmem:[#allocation2 + $0x110] sm:$0xff] }
  0x23   :  { %248 = vmatpush.bf16.msra.mxu1 %v1549_v7  ;;  %332 = vmatpush.bf16.msra.mxu2 %v1558_v20  ;;  %v1647_v52 = vld [vmem:[#allocation5 + $0x2] ss:$0 sm:$0xff]  ;;  %v1570_v59 = vld [vmem:[#allocation2 + $0x108] sm:$0xff]  ;;  %v1584_v61 = vld [vmem:[#allocation2 + $0x178] sm:$0xff] }
  0x24   :  { %v1569_v60 = vld [vmem:[#allocation2 + $0x100] sm:$0xff]  ;;  %v1583_v62 = vld [vmem:[#allocation2 + $0x170] sm:$0xff]  ;;  %v1582_v63 = vld [vmem:[#allocation2 + $0x168] sm:$0xff] }
  0x25   :  { %v1581_v0 = vld [vmem:[#allocation2 + $0x160] sm:$0xff]  ;;  %v1580_v1 = vld [vmem:[#allocation2 + $0x158] sm:$0xff]  ;;  %v1579_v2 = vld [vmem:[#allocation2 + $0x150] sm:$0xff] }
  0x26   :  { %164 = vmatpush.bf16.msra.mxu0 %v1540_v8  ;;  %418 = vmatpush.bf16.msra.mxu3 %v1566_v34  ;;  %v1648_v3 = vld [vmem:[#allocation5 + $0x3] ss:$0 sm:$0xff]  ;;  %v1589_v14 = vld [vmem:[#allocation7 + $0x20] sm:$0xff]  ;;  %v1586_v18 = vld [vmem:[#allocation7 + $0x8] sm:$0xff] }
  0x27   :  { %249 = vmatpush.bf16.msra.mxu1 %v1548_v9  ;;  %333 = vmatpush.bf16.msra.mxu2 %v1557_v21  ;;  %v1578_v9 = vld [vmem:[#allocation2 + $0x148] sm:$0xff]  ;;  %v1650_v32 = vld [vmem:[#allocation5 + $0x5] ss:$0 sm:$0xff] }
  0x2a   :  { %165 = vmatpush.bf16.msra.mxu0 %v1539_v10  ;;  %419 = vmatpush.bf16.msra.mxu3 %v1565_v35  ;;  %v1577_v10 = vld [vmem:[#allocation2 + $0x140] sm:$0xff] }
  0x2b   :  { %250 = vmatpush.bf16.msra.mxu1 %v1547_v11  ;;  %334 = vmatpush.bf16.msra.mxu2 %v1556_v22  ;;  %v1592_v11 = vld [vmem:[#allocation7 + $0x38] sm:$0xff] }
  0x2e   :  { %166 = vmatpush.bf16.msra.mxu0 %v1538_v12  ;;  %420 = vmatpush.bf16.msra.mxu3 %v1564_v36  ;;  %v1591_v12 = vld [vmem:[#allocation7 + $0x30] sm:$0xff] }
  0x2f   :  { %251 = vmatpush.bf16.msra.mxu1 %v1546_v16  ;;  %335 = vmatpush.bf16.msra.mxu2 %v1555_v23  ;;  %v1587_v16 = vld [vmem:[#allocation7 + $0x10] sm:$0xff] }
  0x32   :  { %167 = vmatpush.bf16.msra.mxu0 %v1537_v13  ;;  %421 = vmatpush.bf16.msra.mxu3 %v1563_v37  ;;  %v1590_v13 = vld [vmem:[#allocation7 + $0x28] sm:$0xff] }
  0x33   :  { %252 = vmatpush.bf16.msra.mxu1 %v1545_v17  ;;  %336 = vmatpush.bf16.msra.mxu2 %v1554_v30  ;;  %v1649_v17 = vld [vmem:[#allocation5 + $0x4] ss:$0 sm:$0xff]  ;;  %v1594_v37 = vld [vmem:[#allocation7 + $0x48] sm:$0xff] }
  0x34   :  { %v1596_v30 = vld [vmem:[#allocation7 + $0x58] sm:$0xff] }
  0x35   :  { %168 = vmatmul.bf16.vlgmr.msra.gmra.mxu0 %v91_v15  ;;  %v1588_v15 = vld [vmem:[#allocation7 + $0x18] sm:$0xff] }
  0x36   :  { %422 = vmatpush.bf16.msra.mxu3 %v1562_v44  ;;  %501 = vmatpush.bf16.msrb.mxu0 %v1576_v46  ;;  %v1603_v44 = vld [vmem:[#allocation7 + $0x90] sm:$0xff] }
  0x37   :  { %337 = vmatpush.bf16.msra.mxu2 %v1553_v31  ;;  %587 = vmatpush.bf16.msrb.mxu1 %v1584_v61  ;;  %v1595_v31 = vld [vmem:[#allocation7 + $0x50] sm:$0xff] }
  0x3a   :  { %423 = vmatpush.bf16.msra.mxu3 %v1561_v45  ;;  %502 = vmatpush.bf16.msrb.mxu0 %v1575_v47  ;;  %v1651_v45 = vld [vmem:[#allocation8] ss:$0 sm:$0xff] }
  0x3b   :  { %588 = vmatpush.bf16.msrb.mxu1 %v1583_v62  ;;  %670 = vmatpush.bf16.msrb.mxu2 %v1592_v11 }
  0x3e   :  { %503 = vmatpush.bf16.msrb.mxu0 %v1574_v48 }
  0x3f   :  { %589 = vmatpush.bf16.msrb.mxu1 %v1582_v63  ;;  %671 = vmatpush.bf16.msrb.mxu2 %v1591_v12 }
  0x42   :  { %504 = vmatpush.bf16.msrb.mxu0 %v1573_v49 }
  0x43   :  { %590 = vmatpush.bf16.msrb.mxu1 %v1581_v0  ;;  %672 = vmatpush.bf16.msrb.mxu2 %v1590_v13 }
  0x46   :  { %505 = vmatpush.bf16.msrb.mxu0 %v1572_v50 }
  0x47   :  { %591 = vmatpush.bf16.msrb.mxu1 %v1580_v1  ;;  %673 = vmatpush.bf16.msrb.mxu2 %v1589_v14  ;;  %v1610_v1 = vld [vmem:[#allocation7 + $0xc8] sm:$0xff] }
  0x4a   :  { %506 = vmatpush.bf16.msrb.mxu0 %v1571_v51  ;;  %v1602_v51 = vld [vmem:[#allocation7 + $0x88] sm:$0xff] }
  0x4b   :  { %592 = vmatpush.bf16.msrb.mxu1 %v1579_v2  ;;  %674 = vmatpush.bf16.msrb.mxu2 %v1588_v15  ;;  %v1609_v2 = vld [vmem:[#allocation7 + $0xc0] sm:$0xff] }
  0x4e   :  { %507 = vmatpush.bf16.msrb.mxu0 %v1570_v59  ;;  %v1652_v59 = vld [vmem:[#allocation8 + $0x1] ss:$0 sm:$0xff] }
  0x4f   :  { %593 = vmatpush.bf16.msrb.mxu1 %v1578_v9  ;;  %675 = vmatpush.bf16.msrb.mxu2 %v1587_v16  ;;  %v1653_v9 = vld [vmem:[#allocation8 + $0x2] ss:$0 sm:$0xff]  ;;  %v1618_v16 = vld [vmem:[#allocation7 + $0x108] sm:$0xff] }
  0x52   :  { %508 = vmatpush.bf16.msrb.mxu0 %v1569_v60 }
  0x53   :  { %594 = vmatpush.bf16.msrb.mxu1 %v1577_v10  ;;  %676 = vmatpush.bf16.msrb.mxu2 %v1586_v18  ;;  %v1632_v18 = vld [vmem:[#allocation7 + $0x178] sm:$0xff] }
  0xb2   :  { %v169_v25 = vpop.f32.mrf.mxu0 }
  0xb3   :  { %v170_v26 = vadd.f32 %v1645_v24, %v169_v25  ;;  %v1585_v25 = vld [vmem:[#allocation7] sm:$0xff] }
  0xb4   :  { %677 = vmatpush.bf16.msrb.mxu2 %v1585_v25 }
  0xb5   :  { %v173_v27 = vmax.f32 %v170_v26, 0.0  ;;  %v1600_v26 = vld [vmem:[#allocation7 + $0x78] sm:$0xff] }
  0xb6   :  { %755 = vmatpush.bf16.msrb.mxu3 %v1600_v26 }
  0xb7   :  { %v174_v28 = vpack.c.bf16 %v173_v27, %v173_v27 }
  0xb9   :  { %253 = vmatmul.bf16.vlgmr.msra.gmra.mxu1 %v174_v28  ;;  %v1598_v28 = vld [vmem:[#allocation7 + $0x68] sm:$0xff] }
  0xba   :  { %v171_v29 = vpop.f32.mrf.mxu0 }
  0xbb   :  { %v1597_v29 = vld [vmem:[#allocation7 + $0x60] sm:$0xff] }
 0x136   :  { %v254_v39 = vpop.f32.mrf.mxu1 }
 0x137   :  { %v255_v40 = vadd.f32 %v1646_v38, %v254_v39  ;;  %v1593_v38 = vld [vmem:[#allocation7 + $0x40] sm:$0xff]  ;;  %v1608_v39 = vld [vmem:[#allocation7 + $0xb8] sm:$0xff] }
 0x138   :  { %840 = vmatpush.bf16.msra.mxu0 %v1608_v39 }
 0x139   :  { %v258_v41 = vmax.f32 %v255_v40, 0.0  ;;  %v1607_v40 = vld [vmem:[#allocation7 + $0xb0] sm:$0xff] }
 0x13b   :  { %v259_v42 = vpack.c.bf16 %v258_v41, %v258_v41  ;;  %v1606_v41 = vld [vmem:[#allocation7 + $0xa8] sm:$0xff] }
 0x13c   :  { %841 = vmatpush.bf16.msra.mxu0 %v1607_v40 }
 0x13d   :  { %338 = vmatmul.bf16.vlgmr.msra.gmra.mxu2 %v259_v42  ;;  %v1605_v42 = vld [vmem:[#allocation7 + $0xa0] sm:$0xff] }
 0x13e   :  { %v256_v43 = vpop.f32.mrf.mxu1 }
 0x13f   :  { %v1604_v43 = vld [vmem:[#allocation7 + $0x98] sm:$0xff] }
 0x140   :  { %842 = vmatpush.bf16.msra.mxu0 %v1606_v41  ;;  %v1656_v41 = vld [vmem:[#allocation8 + $0x5] ss:$0 sm:$0xff] }
 0x144   :  { %843 = vmatpush.bf16.msra.mxu0 %v1605_v42 }
 0x148   :  { %844 = vmatpush.bf16.msra.mxu0 %v1604_v43 }
 0x14c   :  { %845 = vmatpush.bf16.msra.mxu0 %v1603_v44 }
 0x150   :  { %846 = vmatpush.bf16.msra.mxu0 %v1602_v51 }
 0x1c0   :  { %v339_v53 = vpop.f32.mrf.mxu2 }
 0x1c1   :  { %v340_v54 = vadd.f32 %v1647_v52, %v339_v53  ;;  %v1601_v52 = vld [vmem:[#allocation7 + $0x80] sm:$0xff]  ;;  %v1616_v53 = vld [vmem:[#allocation7 + $0xf8] sm:$0xff] }
 0x1c2   :  { %847 = vmatpush.bf16.msra.mxu0 %v1601_v52  ;;  %926 = vmatpush.bf16.msra.mxu1 %v1616_v53 }
 0x1c3   :  { %v343_v55 = vmax.f32 %v340_v54, 0.0  ;;  %v1615_v54 = vld [vmem:[#allocation7 + $0xf0] sm:$0xff] }
 0x1c5   :  { %v344_v56 = vadd.f32 %v343_v55, %v173_v27  ;;  %v1599_v27 = vld [vmem:[#allocation7 + $0x70] sm:$0xff]  ;;  %v1614_v55 = vld [vmem:[#allocation7 + $0xe8] sm:$0xff] }
 0x1c6   :  { %756 = vmatpush.bf16.msrb.mxu3 %v1599_v27  ;;  %927 = vmatpush.bf16.msra.mxu1 %v1615_v54 }
 0x1c7   :  { %v345_v57 = vpack.c.bf16 %v344_v56, %v344_v56 }
 0x1c8   :  { %v341_v58 = vpop.f32.mrf.mxu2 }
 0x1c9   :  { %424 = vmatmul.bf16.vlgmr.msra.gmra.mxu3 %v345_v57  ;;  %v1612_v57 = vld [vmem:[#allocation7 + $0xd8] sm:$0xff]  ;;  %v1611_v58 = vld [vmem:[#allocation7 + $0xd0] sm:$0xff] }
 0x1ca   :  { %757 = vmatpush.bf16.msrb.mxu3 %v1598_v28  ;;  %928 = vmatpush.bf16.msra.mxu1 %v1614_v55 }
 0x1ce   :  { %758 = vmatpush.bf16.msrb.mxu3 %v1597_v29 }
 0x1d2   :  { %759 = vmatpush.bf16.msrb.mxu3 %v1596_v30  ;;  %v1626_v30 = vld [vmem:[#allocation7 + $0x148] sm:$0xff] }
 0x1d6   :  { %760 = vmatpush.bf16.msrb.mxu3 %v1595_v31  ;;  %v1625_v31 = vld [vmem:[#allocation7 + $0x140] sm:$0xff] }
 0x1da   :  { %761 = vmatpush.bf16.msrb.mxu3 %v1594_v37 }
 0x1de   :  { %762 = vmatpush.bf16.msrb.mxu3 %v1593_v38 }
 0x1e2   :  { %1097 = vmatpush.bf16.msra.mxu3 %v1632_v18 }
 0x24c   :  { %v425_v4 = vpop.f32.mrf.mxu3 }
 0x24d   :  { %v426_v5 = vadd.f32 %v1648_v3, %v425_v4  ;;  %v1624_v3 = vld [vmem:[#allocation7 + $0x138] sm:$0xff]  ;;  %v1623_v4 = vld [vmem:[#allocation7 + $0x130] sm:$0xff] }
 0x24e   :  { %1011 = vmatpush.bf16.msra.mxu2 %v1624_v3 }
 0x24f   :  { %v429_v6 = vmax.f32 %v426_v5, 0.0  ;;  %v1622_v5 = vld [vmem:[#allocation7 + $0x128] sm:$0xff] }
 0x251   :  { %v430_v7 = vpack.c.bf16 %v429_v6, %v429_v6  ;;  %v1621_v6 = vld [vmem:[#allocation7 + $0x120] sm:$0xff] }
 0x252   :  { %1012 = vmatpush.bf16.msra.mxu2 %v1623_v4 }
 0x253   :  { %509 = vmatmul.bf16.vlgmr.msrb.gmra.mxu0 %v430_v7  ;;  %v1620_v7 = vld [vmem:[#allocation7 + $0x118] sm:$0xff] }
 0x254   :  { %v427_v8 = vpop.f32.mrf.mxu3 }
 0x255   :  { %v1619_v8 = vld [vmem:[#allocation7 + $0x110] sm:$0xff] }
 0x256   :  { %1013 = vmatpush.bf16.msra.mxu2 %v1622_v5 }
 0x25a   :  { %1014 = vmatpush.bf16.msra.mxu2 %v1621_v6 }
 0x25e   :  { %1015 = vmatpush.bf16.msra.mxu2 %v1620_v7 }
 0x262   :  { %1016 = vmatpush.bf16.msra.mxu2 %v1619_v8 }
 0x266   :  { %1017 = vmatpush.bf16.msra.mxu2 %v1618_v16 }
 0x2d0   :  { %v510_v19 = vpop.f32.mrf.mxu0 }
 0x2d1   :  { %v511_v20 = vadd.f32 %v1649_v17, %v510_v19  ;;  %v1617_v17 = vld [vmem:[#allocation7 + $0x100] sm:$0xff]  ;;  %v1631_v19 = vld [vmem:[#allocation7 + $0x170] sm:$0xff] }
 0x2d2   :  { %1018 = vmatpush.bf16.msra.mxu2 %v1617_v17  ;;  %1098 = vmatpush.bf16.msra.mxu3 %v1631_v19 }
 0x2d3   :  { %v514_v21 = vmax.f32 %v511_v20, 0.0  ;;  %v1630_v20 = vld [vmem:[#allocation7 + $0x168] sm:$0xff] }
 0x2d5   :  { %v515_v22 = vadd.f32 %v514_v21, %v344_v56  ;;  %v1613_v56 = vld [vmem:[#allocation7 + $0xe0] sm:$0xff] }
 0x2d6   :  { %929 = vmatpush.bf16.msra.mxu1 %v1613_v56  ;;  %1099 = vmatpush.bf16.msra.mxu3 %v1630_v20  ;;  %v1629_v21 = vld [vmem:[#allocation7 + $0x160] sm:$0xff] }
 0x2d7   :  { %v516_v23 = vpack.c.bf16 %v515_v22, %v515_v22  ;;  %v1628_v22 = vld [vmem:[#allocation7 + $0x158] sm:$0xff] }
 0x2d8   :  { %v512_v24 = vpop.f32.mrf.mxu0 }
 0x2d9   :  { %595 = vmatmul.bf16.vlgmr.msrb.gmra.mxu1 %v516_v23  ;;  %v1627_v23 = vld [vmem:[#allocation7 + $0x150] sm:$0xff]  ;;  %v1654_v24 = vld [vmem:[#allocation8 + $0x3] ss:$0 sm:$0xff] }
 0x2da   :  { %930 = vmatpush.bf16.msra.mxu1 %v1612_v57  ;;  %1100 = vmatpush.bf16.msra.mxu3 %v1629_v21 }
 0x2de   :  { %931 = vmatpush.bf16.msra.mxu1 %v1611_v58  ;;  %1101 = vmatpush.bf16.msra.mxu3 %v1628_v22 }
 0x2e2   :  { %932 = vmatpush.bf16.msra.mxu1 %v1610_v1  ;;  %1102 = vmatpush.bf16.msra.mxu3 %v1627_v23 }
 0x2e6   :  { %933 = vmatpush.bf16.msra.mxu1 %v1609_v2  ;;  %1103 = vmatpush.bf16.msra.mxu3 %v1626_v30 }
 0x2ea   :  { %1104 = vmatpush.bf16.msra.mxu3 %v1625_v31 }
 0x356   :  { %v596_v33 = vpop.f32.mrf.mxu1 }
 0x357   :  { %v597_v34 = vadd.f32 %v1650_v32, %v596_v33  ;;  %v1110_v32 = vld [vmem:[%s1887_s1] sm:$0xff]  ;;  %v1819_v33 = vmov 0   ;;  %s1821_s1 = smov [#allocation11]  }
 0x358   :  { %1644 = vset.pattern.permute.xlu0 %v1819_v33  ;;  %s1134_s29 = sshll.u32 %s1821_s1, 4  ;;  %s1135_s29 = int_to_ptr.vmem [resolvable:$true] %s1134_s29 }
 0x359   :  { %600 = vst [vmem:[#allocation10] sm:$0xff] %v597_v34  ;;  %v601_v35 = vpack.c.bf16 %v597_v34, %v597_v34  ;;  %1113 = vperm.xlu0 %1644, %v1110_v32   ;;  %v1655_v34 = vld [vmem:[#allocation8 + $0x4] ss:$0 sm:$0xff] }
 0x35a   :  { %1128 = dma.vmem_to_hbm [thread:$0]  %s1124_s25, 128, %s1126_s28, [#allocation4]  }
 0x35b   :  { %678 = vmatmul.bf16.vlgmr.msrb.gmra.mxu2 %v601_v35 }
 0x35e   :  { %v598_v36 = vpop.f32.mrf.mxu1 }
 0x3cb   :  { %v1114_v43 = vpop.permute.xlu0 %1113 }
 0x3de   :  { %v679_v46 = vpop.f32.mrf.mxu2 }
 0x3df   :  { %v680_v47 = vadd.f32 %v1651_v45, %v679_v46 }
 0x3e1   :  { %v683_v48 = vmax.f32 %v680_v47, 0.0 }
 0x3e3   :  { %v684_v49 = vpack.c.bf16 %v683_v48, %v683_v48 }
 0x3e5   :  { %763 = vmatmul.bf16.vlgmr.msrb.gmra.mxu3 %v684_v49 }
 0x3e6   :  { %v681_v50 = vpop.f32.mrf.mxu2 }
 0x468   :  { %v764_v60 = vpop.f32.mrf.mxu3 }
 0x469   :  { %v765_v61 = vadd.f32 %v1652_v59, %v764_v60 }
 0x46b   :  { %v768_v62 = vmax.f32 %v765_v61, 0.0 }
 0x46d   :  { %v769_v63 = vpack.c.bf16 %v768_v62, %v768_v62 }
 0x46f   :  { %848 = vmatmul.bf16.vlgmr.msra.gmra.mxu0 %v769_v63 }
 0x470   :  { %v766_v0 = vpop.f32.mrf.mxu3 }
 0x4ec   :  { %v849_v10 = vpop.f32.mrf.mxu0 }
 0x4ed   :  { %v850_v11 = vadd.f32 %v1653_v9, %v849_v10 }
 0x4ef   :  { %v853_v12 = vmax.f32 %v850_v11, 0.0 }
 0x4f1   :  { %v854_v13 = vadd.f32 %v853_v12, %v683_v48 }
 0x4f3   :  { %v855_v14 = vpack.c.bf16 %v854_v13, %v854_v13 }
 0x4f4   :  { %v851_v15 = vpop.f32.mrf.mxu0 }
 0x4f5   :  { %934 = vmatmul.bf16.vlgmr.msra.gmra.mxu1 %v855_v14 }
 0x572   :  { %v935_v25 = vpop.f32.mrf.mxu1 }
 0x573   :  { %v936_v26 = vadd.f32 %v1654_v24, %v935_v25 }
 0x575   :  { %v939_v27 = vmax.f32 %v936_v26, 0.0 }
 0x577   :  { %v940_v28 = vpack.c.bf16 %v939_v27, %v939_v27 }
 0x579   :  { %1019 = vmatmul.bf16.vlgmr.msra.gmra.mxu2 %v940_v28 }
 0x57a   :  { %v937_v29 = vpop.f32.mrf.mxu1 }
 0x5fc   :  { %v1020_v35 = vpop.f32.mrf.mxu2 }
 0x5fd   :  { %v1021_v36 = vadd.f32 %v1655_v34, %v1020_v35 }
 0x5ff   :  { %v1024_v37 = vmax.f32 %v1021_v36, 0.0 }
 0x601   :  { %v1025_v38 = vadd.f32 %v1024_v37, %v854_v13 }
 0x603   :  { %v1026_v39 = vpack.c.bf16 %v1025_v38, %v1025_v38 }
 0x604   :  { %v1022_v40 = vpop.f32.mrf.mxu2 }
 0x605   :  { %1105 = vmatmul.bf16.vlgmr.msra.gmra.mxu3 %v1026_v39 }
 0x688   :  { %v1106_v42 = vpop.f32.mrf.mxu3 }
 0x689   :  { %v1107_v44 = vadd.f32 %v1656_v41, %v1106_v42 }
 0x68b   :  { %v1116_v45 = vmul.f32 %v1114_v43, %v1107_v44 }
 0x68d   :  { %1117 = vst [vmem:[#allocation11] sm:$0xff] %v1116_v45 }
 0x68e   :  { %1139 = dma.vmem_to_hbm [thread:$0]  %s1135_s29, 128, %s1137_s9, [#allocation12]  }
 0x690   :  { %v1108_v46 = vpop.f32.mrf.mxu3 }
 0x691   :  { %1807 = dma.done.wait [#allocation4], 128  }
 0x692   :  { %1808 = vsyncadd [#allocation4], 4294967168 }
 0x693   :  { %1809 = dma.done.wait [#allocation12], 128  }
 0x694   :  { %1810 = vsyncadd [#allocation12], 4294967168 }
 0x695   :  { %1148 = vsyncpa [#allocation3], 1 }
 0x696   :  { %1149 = vsyncpa [#allocation6], 1 }
 0x697   :  { %1150 = vsyncpa [#allocation9], 1 }
 0x698   :  { %1151 = vsyncpa [#allocation4], 1 }
 0x699   :  { %1152 = vsyncpa [#allocation12], 1 }

</bundles_post_ra>
